<compile_context>
chip_gen: v5e
topology: v5e:2x2
jax: 0.10.0
libtpu: 0.0.40
codegen_flags: <defaults>
</compile_context>

<pallas_src>
import jax
import jax.numpy as jnp
from jax.experimental import pallas as pl
from jax.experimental.pallas import tpu as pltpu

N = 2                      # batch (small test shape)
C_IN, C_OUT = 1, 16        # conv channels
H = W = 28                 # input spatial (pooled spatial = 14, as in Linear)
K = 3                      # conv kernel size (assumed; missing in the source)
HP, WP = H // 2, W // 2    # 14, 14 after MaxPool2d(2, 2)
HW = HP * WP               # 196 valid pooled spatial positions
SP = 256                   # lane-padded spatial block (196 -> 2*128)
NSP = N * SP               # 512  : lane width of one pool-offset chunk
NTAP = K * K + 1           # 9 conv taps + 1 bias tap
KPAD = 16                  # conv contraction rows padded to bf16 sublane tile
A2W = 4 * NSP              # 2048 : all four pool offsets side by side
FLATP = C_OUT * SP         # 4096 : padded flatten width fed to the linear
FLAT = C_OUT * HW          # 3136 : true flatten width (PyTorch semantics)
NCLS = 10
NP = 8                     # sublane-padded batch rows for the linear matmul
NC_PAD = 128               # lane-padded logits width


# ---------------------------------------------------------------------------
# Fused kernel: Conv2d(1->16,3x3,pad=1) + bias + MaxPool2d(2,2) + Flatten
#               + Linear(3136 -> 10)
# ---------------------------------------------------------------------------
def testnet_kernel(a2_ref, cwb_ref, wl_ref, lb_ref, out_ref, flat_ref):
    # a2_ref  : VMEM [KPAD, A2W]   bf16  patches; col = od*NSP + n*SP + hw,
    #           row 9 = bias tap (1.0 on valid hw, 0 on pad lanes),
    #           rows 10..15 are zero padding.
    # cwb_ref : VMEM [C_OUT, KPAD] bf16  conv weights (tap = kh*3+kw), col 9 =
    #           conv bias, cols 10..15 zero.
    # wl_ref  : VMEM [NCLS, FLATP] f32   linear weight; col = c*SP + hw,
    #           pad columns (hw >= 196) are zero.
    # lb_ref  : VMEM [1, NCLS]     f32   linear bias
    # out_ref : VMEM [NP, NC_PAD]  f32   logits (valid region [:N, :NCLS])
    # flat_ref: VMEM [NP, FLATP]   f32   scratch: flat[n, c*SP + hw]

    # --- Conv + bias + MaxPool: one MXU matmul, then max over 4 lane chunks -
    conv_all = jnp.dot(cwb_ref[...], a2_ref[...],
                       preferred_element_type=jnp.float32)       # [C_OUT, A2W]
    pooled = jnp.maximum(
        jnp.maximum(conv_all[:, 0 * NSP:1 * NSP], conv_all[:, 1 * NSP:2 * NSP]),
        jnp.maximum(conv_all[:, 2 * NSP:3 * NSP], conv_all[:, 3 * NSP:4 * NSP]))
    # pooled[c, n*SP + hw]; pad lanes (hw >= 196) are exactly 0.

    # --- Flatten relayout [c, n*SP+hw] -> flat[n, c*SP+hw] -------------------
    # Direct value->VMEM stores, 128-lane aligned; rows >= N stay
    # uninitialized and are sliced off by the wrapper.
    for n in range(N):
        for c in range(C_OUT):
            flat_ref[n:n + 1, c * SP:(c + 1) * SP] = (
                pooled[c:c + 1, n * SP:(n + 1) * SP])

    # --- Linear(3136 -> 10): lane-dense weight, contract dim 1 (A @ B^T) ----
    logits = jax.lax.dot_general(
        flat_ref[...], wl_ref[...],
        dimension_numbers=(((1,), (1,)), ((), ())),
        preferred_element_type=jnp.float32)                      # [NP, NCLS]
    out_ref[:, 0:NCLS] = logits + lb_ref[...]


def testnet_pallas(a2, cwb, wl, lb):
    return pl.pallas_call(
        testnet_kernel,
        out_shape=jax.ShapeDtypeStruct((NP, NC_PAD), jnp.float32),
        in_specs=[pl.BlockSpec(memory_space=pltpu.MemorySpace.VMEM)] * 4,
        out_specs=pl.BlockSpec(memory_space=pltpu.MemorySpace.VMEM),
        scratch_shapes=[pltpu.VMEM((NP, FLATP), jnp.float32)],   # flat scratch
    )(a2, cwb, wl, lb)


# ---------------------------------------------------------------------------
# One-time parameter layout prep (kept OUT of the per-call jit path)
# ---------------------------------------------------------------------------
def prepare_params(conv_w, conv_b, lin_w, lin_b):
    # Conv weight [16,1,3,3] -> [16,9]; bias folded as column 9; zero-pad to
    # KPAD contraction columns; bf16.
    cwb = jnp.concatenate(
        [conv_w.reshape(C_OUT, K * K), conv_b.reshape(C_OUT, 1)], axis=1)
    cwb = jnp.pad(cwb, ((0, 0), (0, KPAD - NTAP))).astype(jnp.bfloat16)
    # Linear weight [10, 3136] (col = c*196+hw) -> lane-padded [10, 4096]
    # (col = c*256+hw); pad columns are zero (kernel relies on this).
    wl = jnp.pad(lin_w.reshape(NCLS, C_OUT, HW),
                 ((0, 0), (0, 0), (0, SP - HW))).reshape(NCLS, FLATP)
    lb = lin_b.reshape(1, NCLS)
    return cwb, wl, lb


# ---------------------------------------------------------------------------
# Forward pass (activation layout plumbing in XLA; all compute in the kernel)
# ---------------------------------------------------------------------------
@jax.jit
def testnet_forward(x, cwb, wl, lb):
    xp = jnp.pad(x[:, 0], ((0, 0), (1, 1), (1, 1)))              # [N, 30, 30]

    # 16 distinct stride-2 shifted views, flattened and lane-padded:
    # shift[(s,t)][n*SP + i*14 + j] = xp[n, s + 2i, t + 2j]
    shift = {}
    for s in range(4):
        for t in range(4):
            p = xp[:, s:s + 2 * HP - 1:2, t:t + 2 * WP - 1:2]    # [N, 14, 14]
            p = p.reshape(N, HW)
            p = jnp.pad(p, ((0, 0), (0, SP - HW)))               # [N, 256]
            shift[(s, t)] = p.reshape(NSP)                       # [512]
    ones_row = jnp.pad(jnp.ones((N, HW), jnp.float32),
                       ((0, 0), (0, SP - HW))).reshape(NSP)      # bias tap

    # a2[tap, od*NSP + n*SP + hw], tap = kh*3+kw, od = di*2+dj; row 9 = bias.
    rows = [jnp.concatenate([shift[(di + kh, dj + kw)]
                             for di in range(2) for dj in range(2)])
            for kh in range(K) for kw in range(K)]
    rows.append(jnp.concatenate([ones_row] * 4))
    a2 = jnp.stack(rows)                                         # [10, 2048]
    a2 = jnp.pad(a2, ((0, KPAD - NTAP), (0, 0))).astype(jnp.bfloat16)

    out_pad = testnet_pallas(a2, cwb, wl, lb)                    # [8, 128]
    return out_pad[:N, :NCLS]                                    # [N, 10]


# ---------------------------------------------------------------------------
# Plain-JAX references
# ---------------------------------------------------------------------------
def _reference_f32(x, conv_w, conv_b, lin_w, lin_b):
    xp = jnp.pad(x[:, 0], ((0, 0), (1, 1), (1, 1)))
    conv = jnp.zeros((N, C_OUT, H, W), jnp.float32)
    for kh in range(K):
        for kw in range(K):
            conv = conv + (conv_w[:, 0, kh, kw][None, :, None, None]
                           * xp[:, None, kh:kh + H, kw:kw + W])
    conv = conv + conv_b[None, :, None, None]
    pooled = conv.reshape(N, C_OUT, HP, 2, WP, 2).max(axis=(3, 5))
    return pooled.reshape(N, FLAT) @ lin_w.T + lin_b


def reference_bf16_conv(x, conv_w, conv_b, lin_w, lin_b):
    # Mirrors the kernel's precision: conv operands rounded to bf16,
    # everything accumulated / applied in f32.
    xr = x.astype(jnp.bfloat16).astype(jnp.float32)
    cwr = conv_w.astype(jnp.bfloat16).astype(jnp.float32)
    cbr = conv_b.astype(jnp.bfloat16).astype(jnp.float32)
    return _reference_f32(xr, cwr, cbr, lin_w, lin_b)


if __name__ == "__main__":
    key = jax.random.PRNGKey(0)
    k1, k2, k3, k4, k5 = jax.random.split(key, 5)
    conv_w = jax.random.normal(k1, (C_OUT, C_IN, K, K), jnp.float32) * 0.1
    conv_b = jax.random.normal(k2, (C_OUT,), jnp.float32) * 0.1
    lin_w = jax.random.normal(k3, (NCLS, FLAT), jnp.float32) * 0.02
    lin_b = jax.random.normal(k4, (NCLS,), jnp.float32) * 0.02
    x = jax.random.normal(k5, (N, C_IN, H, W), jnp.float32)

    cwb, wl, lb = prepare_params(conv_w, conv_b, lin_w, lin_b)   # once, offline
    out = testnet_forward(x, cwb, wl, lb)
    out = jax.block_until_ready(out)
    assert out.shape == (N, NCLS) and out.dtype == jnp.float32

    # Tight check against a reference using the same bf16-rounded conv operands.
    ref = reference_bf16_conv(x, conv_w, conv_b, lin_w, lin_b)
    assert jnp.allclose(out, ref, rtol=1e-3, atol=1e-3), "Pallas output mismatch"
    # Loose sanity check against the full-f32 (PyTorch-semantics) reference.
    ref32 = _reference_f32(x, conv_w, conv_b, lin_w, lin_b)
    assert jnp.allclose(out, ref32, rtol=2e-2, atol=2e-2), "Drifted from f32 ref"

    print("KERNEL_OK")
</pallas_src>

<mosaic_0001>
module attributes {stable_mosaic.version = 11 : i64} {
  func.func @testnet_kernel(%arg0: memref<16x2048xbf16, #tpu.memory_space<vmem>>, %arg1: memref<16x16xbf16, #tpu.memory_space<vmem>>, %arg2: memref<10x4096xf32, #tpu.memory_space<vmem>>, %arg3: memref<1x10xf32, #tpu.memory_space<vmem>>, %arg4: memref<8x128xf32, #tpu.memory_space<vmem>>, %arg5: memref<8x4096xf32, #tpu.memory_space<vmem>>) attributes {dimension_semantics = [], scalar_prefetch = 0 : i64, scratch_operands = 1 : i64, tpu.core_type = #tpu.core_type<tc>} {
    %c0 = arith.constant 0 : index
    %c0_0 = arith.constant 0 : index
    %0 = vector.load %arg1[%c0, %c0_0] : memref<16x16xbf16, #tpu.memory_space<vmem>>, vector<16x16xbf16>
    %c0_1 = arith.constant 0 : index
    %c0_2 = arith.constant 0 : index
    %1 = vector.load %arg0[%c0_1, %c0_2] : memref<16x2048xbf16, #tpu.memory_space<vmem>>, vector<16x2048xbf16>
    %cst = arith.constant dense<0.000000e+00> : vector<16x2048xf32>
    %2 = tpu.matmul %0, %1, %cst {dimension_numbers = #tpu.dot_dimension_numbers<[1], [0], [0], [1], [0, 0, 1, 1], [], []>} : vector<16x16xbf16>, vector<16x2048xbf16>, vector<16x2048xf32> -> vector<16x2048xf32>
    %3 = vector.extract_strided_slice %2 {offsets = [0, 0], sizes = [16, 512], strides = [1, 1]} : vector<16x2048xf32> to vector<16x512xf32>
    %4 = vector.extract_strided_slice %2 {offsets = [0, 512], sizes = [16, 512], strides = [1, 1]} : vector<16x2048xf32> to vector<16x512xf32>
    %5 = arith.maximumf %3, %4 : vector<16x512xf32>
    %6 = vector.extract_strided_slice %2 {offsets = [0, 1024], sizes = [16, 512], strides = [1, 1]} : vector<16x2048xf32> to vector<16x512xf32>
    %7 = vector.extract_strided_slice %2 {offsets = [0, 1536], sizes = [16, 512], strides = [1, 1]} : vector<16x2048xf32> to vector<16x512xf32>
    %8 = arith.maximumf %6, %7 : vector<16x512xf32>
    %9 = arith.maximumf %5, %8 : vector<16x512xf32>
    %10 = vector.extract_strided_slice %9 {offsets = [0, 0], sizes = [1, 256], strides = [1, 1]} : vector<16x512xf32> to vector<1x256xf32>
    %c0_3 = arith.constant 0 : index
    %c0_4 = arith.constant 0 : index
    %11 = vector.load %arg5[%c0_3, %c0_4] : memref<8x4096xf32, #tpu.memory_space<vmem>>, vector<1x256xf32>
    tpu.vector_store %arg5[%c0_3, %c0_4], %10 {strides = array<i32>} : memref<8x4096xf32, #tpu.memory_space<vmem>>, vector<1x256xf32>,
    %12 = vector.extract_strided_slice %9 {offsets = [1, 0], sizes = [1, 256], strides = [1, 1]} : vector<16x512xf32> to vector<1x256xf32>
    %c0_5 = arith.constant 0 : index
    %c256 = arith.constant 256 : index
    %13 = vector.load %arg5[%c0_5, %c256] : memref<8x4096xf32, #tpu.memory_space<vmem>>, vector<1x256xf32>
    tpu.vector_store %arg5[%c0_5, %c256], %12 {strides = array<i32>} : memref<8x4096xf32, #tpu.memory_space<vmem>>, vector<1x256xf32>,
    %14 = vector.extract_strided_slice %9 {offsets = [2, 0], sizes = [1, 256], strides = [1, 1]} : vector<16x512xf32> to vector<1x256xf32>
    %c0_6 = arith.constant 0 : index
    %c512 = arith.constant 512 : index
    %15 = vector.load %arg5[%c0_6, %c512] : memref<8x4096xf32, #tpu.memory_space<vmem>>, vector<1x256xf32>
    tpu.vector_store %arg5[%c0_6, %c512], %14 {strides = array<i32>} : memref<8x4096xf32, #tpu.memory_space<vmem>>, vector<1x256xf32>,
    %16 = vector.extract_strided_slice %9 {offsets = [3, 0], sizes = [1, 256], strides = [1, 1]} : vector<16x512xf32> to vector<1x256xf32>
    %c0_7 = arith.constant 0 : index
    %c768 = arith.constant 768 : index
    %17 = vector.load %arg5[%c0_7, %c768] : memref<8x4096xf32, #tpu.memory_space<vmem>>, vector<1x256xf32>
    tpu.vector_store %arg5[%c0_7, %c768], %16 {strides = array<i32>} : memref<8x4096xf32, #tpu.memory_space<vmem>>, vector<1x256xf32>,
    %18 = vector.extract_strided_slice %9 {offsets = [4, 0], sizes = [1, 256], strides = [1, 1]} : vector<16x512xf32> to vector<1x256xf32>
    %c0_8 = arith.constant 0 : index
    %c1024 = arith.constant 1024 : index
    %19 = vector.load %arg5[%c0_8, %c1024] : memref<8x4096xf32, #tpu.memory_space<vmem>>, vector<1x256xf32>
    tpu.vector_store %arg5[%c0_8, %c1024], %18 {strides = array<i32>} : memref<8x4096xf32, #tpu.memory_space<vmem>>, vector<1x256xf32>,
    %20 = vector.extract_strided_slice %9 {offsets = [5, 0], sizes = [1, 256], strides = [1, 1]} : vector<16x512xf32> to vector<1x256xf32>
    %c0_9 = arith.constant 0 : index
    %c1280 = arith.constant 1280 : index
    %21 = vector.load %arg5[%c0_9, %c1280] : memref<8x4096xf32, #tpu.memory_space<vmem>>, vector<1x256xf32>
    tpu.vector_store %arg5[%c0_9, %c1280], %20 {strides = array<i32>} : memref<8x4096xf32, #tpu.memory_space<vmem>>, vector<1x256xf32>,
    %22 = vector.extract_strided_slice %9 {offsets = [6, 0], sizes = [1, 256], strides = [1, 1]} : vector<16x512xf32> to vector<1x256xf32>
    %c0_10 = arith.constant 0 : index
    %c1536 = arith.constant 1536 : index
    %23 = vector.load %arg5[%c0_10, %c1536] : memref<8x4096xf32, #tpu.memory_space<vmem>>, vector<1x256xf32>
    tpu.vector_store %arg5[%c0_10, %c1536], %22 {strides = array<i32>} : memref<8x4096xf32, #tpu.memory_space<vmem>>, vector<1x256xf32>,
    %24 = vector.extract_strided_slice %9 {offsets = [7, 0], sizes = [1, 256], strides = [1, 1]} : vector<16x512xf32> to vector<1x256xf32>
    %c0_11 = arith.constant 0 : index
    %c1792 = arith.constant 1792 : index
    %25 = vector.load %arg5[%c0_11, %c1792] : memref<8x4096xf32, #tpu.memory_space<vmem>>, vector<1x256xf32>
    tpu.vector_store %arg5[%c0_11, %c1792], %24 {strides = array<i32>} : memref<8x4096xf32, #tpu.memory_space<vmem>>, vector<1x256xf32>,
    %26 = vector.extract_strided_slice %9 {offsets = [8, 0], sizes = [1, 256], strides = [1, 1]} : vector<16x512xf32> to vector<1x256xf32>
    %c0_12 = arith.constant 0 : index
    %c2048 = arith.constant 2048 : index
    %27 = vector.load %arg5[%c0_12, %c2048] : memref<8x4096xf32, #tpu.memory_space<vmem>>, vector<1x256xf32>
    tpu.vector_store %arg5[%c0_12, %c2048], %26 {strides = array<i32>} : memref<8x4096xf32, #tpu.memory_space<vmem>>, vector<1x256xf32>,
    %28 = vector.extract_strided_slice %9 {offsets = [9, 0], sizes = [1, 256], strides = [1, 1]} : vector<16x512xf32> to vector<1x256xf32>
    %c0_13 = arith.constant 0 : index
    %c2304 = arith.constant 2304 : index
    %29 = vector.load %arg5[%c0_13, %c2304] : memref<8x4096xf32, #tpu.memory_space<vmem>>, vector<1x256xf32>
    tpu.vector_store %arg5[%c0_13, %c2304], %28 {strides = array<i32>} : memref<8x4096xf32, #tpu.memory_space<vmem>>, vector<1x256xf32>,
    %30 = vector.extract_strided_slice %9 {offsets = [10, 0], sizes = [1, 256], strides = [1, 1]} : vector<16x512xf32> to vector<1x256xf32>
    %c0_14 = arith.constant 0 : index
    %c2560 = arith.constant 2560 : index
    %31 = vector.load %arg5[%c0_14, %c2560] : memref<8x4096xf32, #tpu.memory_space<vmem>>, vector<1x256xf32>
    tpu.vector_store %arg5[%c0_14, %c2560], %30 {strides = array<i32>} : memref<8x4096xf32, #tpu.memory_space<vmem>>, vector<1x256xf32>,
    %32 = vector.extract_strided_slice %9 {offsets = [11, 0], sizes = [1, 256], strides = [1, 1]} : vector<16x512xf32> to vector<1x256xf32>
    %c0_15 = arith.constant 0 : index
    %c2816 = arith.constant 2816 : index
    %33 = vector.load %arg5[%c0_15, %c2816] : memref<8x4096xf32, #tpu.memory_space<vmem>>, vector<1x256xf32>
    tpu.vector_store %arg5[%c0_15, %c2816], %32 {strides = array<i32>} : memref<8x4096xf32, #tpu.memory_space<vmem>>, vector<1x256xf32>,
    %34 = vector.extract_strided_slice %9 {offsets = [12, 0], sizes = [1, 256], strides = [1, 1]} : vector<16x512xf32> to vector<1x256xf32>
    %c0_16 = arith.constant 0 : index
    %c3072 = arith.constant 3072 : index
    %35 = vector.load %arg5[%c0_16, %c3072] : memref<8x4096xf32, #tpu.memory_space<vmem>>, vector<1x256xf32>
    tpu.vector_store %arg5[%c0_16, %c3072], %34 {strides = array<i32>} : memref<8x4096xf32, #tpu.memory_space<vmem>>, vector<1x256xf32>,
    %36 = vector.extract_strided_slice %9 {offsets = [13, 0], sizes = [1, 256], strides = [1, 1]} : vector<16x512xf32> to vector<1x256xf32>
    %c0_17 = arith.constant 0 : index
    %c3328 = arith.constant 3328 : index
    %37 = vector.load %arg5[%c0_17, %c3328] : memref<8x4096xf32, #tpu.memory_space<vmem>>, vector<1x256xf32>
    tpu.vector_store %arg5[%c0_17, %c3328], %36 {strides = array<i32>} : memref<8x4096xf32, #tpu.memory_space<vmem>>, vector<1x256xf32>,
    %38 = vector.extract_strided_slice %9 {offsets = [14, 0], sizes = [1, 256], strides = [1, 1]} : vector<16x512xf32> to vector<1x256xf32>
    %c0_18 = arith.constant 0 : index
    %c3584 = arith.constant 3584 : index
    %39 = vector.load %arg5[%c0_18, %c3584] : memref<8x4096xf32, #tpu.memory_space<vmem>>, vector<1x256xf32>
    tpu.vector_store %arg5[%c0_18, %c3584], %38 {strides = array<i32>} : memref<8x4096xf32, #tpu.memory_space<vmem>>, vector<1x256xf32>,
    %40 = vector.extract_strided_slice %9 {offsets = [15, 0], sizes = [1, 256], strides = [1, 1]} : vector<16x512xf32> to vector<1x256xf32>
    %c0_19 = arith.constant 0 : index
    %c3840 = arith.constant 3840 : index
    %41 = vector.load %arg5[%c0_19, %c3840] : memref<8x4096xf32, #tpu.memory_space<vmem>>, vector<1x256xf32>
    tpu.vector_store %arg5[%c0_19, %c3840], %40 {strides = array<i32>} : memref<8x4096xf32, #tpu.memory_space<vmem>>, vector<1x256xf32>,
    %42 = vector.extract_strided_slice %9 {offsets = [0, 256], sizes = [1, 256], strides = [1, 1]} : vector<16x512xf32> to vector<1x256xf32>
    %c1 = arith.constant 1 : index
    %c0_20 = arith.constant 0 : index
    %43 = vector.load %arg5[%c1, %c0_20] : memref<8x4096xf32, #tpu.memory_space<vmem>>, vector<1x256xf32>
    tpu.vector_store %arg5[%c1, %c0_20], %42 {strides = array<i32>} : memref<8x4096xf32, #tpu.memory_space<vmem>>, vector<1x256xf32>,
    %44 = vector.extract_strided_slice %9 {offsets = [1, 256], sizes = [1, 256], strides = [1, 1]} : vector<16x512xf32> to vector<1x256xf32>
    %c1_21 = arith.constant 1 : index
    %c256_22 = arith.constant 256 : index
    %45 = vector.load %arg5[%c1_21, %c256_22] : memref<8x4096xf32, #tpu.memory_space<vmem>>, vector<1x256xf32>
    tpu.vector_store %arg5[%c1_21, %c256_22], %44 {strides = array<i32>} : memref<8x4096xf32, #tpu.memory_space<vmem>>, vector<1x256xf32>,
    %46 = vector.extract_strided_slice %9 {offsets = [2, 256], sizes = [1, 256], strides = [1, 1]} : vector<16x512xf32> to vector<1x256xf32>
    %c1_23 = arith.constant 1 : index
    %c512_24 = arith.constant 512 : index
    %47 = vector.load %arg5[%c1_23, %c512_24] : memref<8x4096xf32, #tpu.memory_space<vmem>>, vector<1x256xf32>
    tpu.vector_store %arg5[%c1_23, %c512_24], %46 {strides = array<i32>} : memref<8x4096xf32, #tpu.memory_space<vmem>>, vector<1x256xf32>,
    %48 = vector.extract_strided_slice %9 {offsets = [3, 256], sizes = [1, 256], strides = [1, 1]} : vector<16x512xf32> to vector<1x256xf32>
    %c1_25 = arith.constant 1 : index
    %c768_26 = arith.constant 768 : index
    %49 = vector.load %arg5[%c1_25, %c768_26] : memref<8x4096xf32, #tpu.memory_space<vmem>>, vector<1x256xf32>
    tpu.vector_store %arg5[%c1_25, %c768_26], %48 {strides = array<i32>} : memref<8x4096xf32, #tpu.memory_space<vmem>>, vector<1x256xf32>,
    %50 = vector.extract_strided_slice %9 {offsets = [4, 256], sizes = [1, 256], strides = [1, 1]} : vector<16x512xf32> to vector<1x256xf32>
    %c1_27 = arith.constant 1 : index
    %c1024_28 = arith.constant 1024 : index
    %51 = vector.load %arg5[%c1_27, %c1024_28] : memref<8x4096xf32, #tpu.memory_space<vmem>>, vector<1x256xf32>
    tpu.vector_store %arg5[%c1_27, %c1024_28], %50 {strides = array<i32>} : memref<8x4096xf32, #tpu.memory_space<vmem>>, vector<1x256xf32>,
    %52 = vector.extract_strided_slice %9 {offsets = [5, 256], sizes = [1, 256], strides = [1, 1]} : vector<16x512xf32> to vector<1x256xf32>
    %c1_29 = arith.constant 1 : index
    %c1280_30 = arith.constant 1280 : index
    %53 = vector.load %arg5[%c1_29, %c1280_30] : memref<8x4096xf32, #tpu.memory_space<vmem>>, vector<1x256xf32>
    tpu.vector_store %arg5[%c1_29, %c1280_30], %52 {strides = array<i32>} : memref<8x4096xf32, #tpu.memory_space<vmem>>, vector<1x256xf32>,
    %54 = vector.extract_strided_slice %9 {offsets = [6, 256], sizes = [1, 256], strides = [1, 1]} : vector<16x512xf32> to vector<1x256xf32>
    %c1_31 = arith.constant 1 : index
    %c1536_32 = arith.constant 1536 : index
    %55 = vector.load %arg5[%c1_31, %c1536_32] : memref<8x4096xf32, #tpu.memory_space<vmem>>, vector<1x256xf32>
    tpu.vector_store %arg5[%c1_31, %c1536_32], %54 {strides = array<i32>} : memref<8x4096xf32, #tpu.memory_space<vmem>>, vector<1x256xf32>,
    %56 = vector.extract_strided_slice %9 {offsets = [7, 256], sizes = [1, 256], strides = [1, 1]} : vector<16x512xf32> to vector<1x256xf32>
    %c1_33 = arith.constant 1 : index
    %c1792_34 = arith.constant 1792 : index
    %57 = vector.load %arg5[%c1_33, %c1792_34] : memref<8x4096xf32, #tpu.memory_space<vmem>>, vector<1x256xf32>
    tpu.vector_store %arg5[%c1_33, %c1792_34], %56 {strides = array<i32>} : memref<8x4096xf32, #tpu.memory_space<vmem>>, vector<1x256xf32>,
    %58 = vector.extract_strided_slice %9 {offsets = [8, 256], sizes = [1, 256], strides = [1, 1]} : vector<16x512xf32> to vector<1x256xf32>
    %c1_35 = arith.constant 1 : index
    %c2048_36 = arith.constant 2048 : index
    %59 = vector.load %arg5[%c1_35, %c2048_36] : memref<8x4096xf32, #tpu.memory_space<vmem>>, vector<1x256xf32>
    tpu.vector_store %arg5[%c1_35, %c2048_36], %58 {strides = array<i32>} : memref<8x4096xf32, #tpu.memory_space<vmem>>, vector<1x256xf32>,
    %60 = vector.extract_strided_slice %9 {offsets = [9, 256], sizes = [1, 256], strides = [1, 1]} : vector<16x512xf32> to vector<1x256xf32>
    %c1_37 = arith.constant 1 : index
    %c2304_38 = arith.constant 2304 : index
    %61 = vector.load %arg5[%c1_37, %c2304_38] : memref<8x4096xf32, #tpu.memory_space<vmem>>, vector<1x256xf32>
    tpu.vector_store %arg5[%c1_37, %c2304_38], %60 {strides = array<i32>} : memref<8x4096xf32, #tpu.memory_space<vmem>>, vector<1x256xf32>,
    %62 = vector.extract_strided_slice %9 {offsets = [10, 256], sizes = [1, 256], strides = [1, 1]} : vector<16x512xf32> to vector<1x256xf32>
    %c1_39 = arith.constant 1 : index
    %c2560_40 = arith.constant 2560 : index
    %63 = vector.load %arg5[%c1_39, %c2560_40] : memref<8x4096xf32, #tpu.memory_space<vmem>>, vector<1x256xf32>
    tpu.vector_store %arg5[%c1_39, %c2560_40], %62 {strides = array<i32>} : memref<8x4096xf32, #tpu.memory_space<vmem>>, vector<1x256xf32>,
    %64 = vector.extract_strided_slice %9 {offsets = [11, 256], sizes = [1, 256], strides = [1, 1]} : vector<16x512xf32> to vector<1x256xf32>
    %c1_41 = arith.constant 1 : index
    %c2816_42 = arith.constant 2816 : index
    %65 = vector.load %arg5[%c1_41, %c2816_42] : memref<8x4096xf32, #tpu.memory_space<vmem>>, vector<1x256xf32>
    tpu.vector_store %arg5[%c1_41, %c2816_42], %64 {strides = array<i32>} : memref<8x4096xf32, #tpu.memory_space<vmem>>, vector<1x256xf32>,
    %66 = vector.extract_strided_slice %9 {offsets = [12, 256], sizes = [1, 256], strides = [1, 1]} : vector<16x512xf32> to vector<1x256xf32>
    %c1_43 = arith.constant 1 : index
    %c3072_44 = arith.constant 3072 : index
    %67 = vector.load %arg5[%c1_43, %c3072_44] : memref<8x4096xf32, #tpu.memory_space<vmem>>, vector<1x256xf32>
    tpu.vector_store %arg5[%c1_43, %c3072_44], %66 {strides = array<i32>} : memref<8x4096xf32, #tpu.memory_space<vmem>>, vector<1x256xf32>,
    %68 = vector.extract_strided_slice %9 {offsets = [13, 256], sizes = [1, 256], strides = [1, 1]} : vector<16x512xf32> to vector<1x256xf32>
    %c1_45 = arith.constant 1 : index
    %c3328_46 = arith.constant 3328 : index
    %69 = vector.load %arg5[%c1_45, %c3328_46] : memref<8x4096xf32, #tpu.memory_space<vmem>>, vector<1x256xf32>
    tpu.vector_store %arg5[%c1_45, %c3328_46], %68 {strides = array<i32>} : memref<8x4096xf32, #tpu.memory_space<vmem>>, vector<1x256xf32>,
    %70 = vector.extract_strided_slice %9 {offsets = [14, 256], sizes = [1, 256], strides = [1, 1]} : vector<16x512xf32> to vector<1x256xf32>
    %c1_47 = arith.constant 1 : index
    %c3584_48 = arith.constant 3584 : index
    %71 = vector.load %arg5[%c1_47, %c3584_48] : memref<8x4096xf32, #tpu.memory_space<vmem>>, vector<1x256xf32>
    tpu.vector_store %arg5[%c1_47, %c3584_48], %70 {strides = array<i32>} : memref<8x4096xf32, #tpu.memory_space<vmem>>, vector<1x256xf32>,
    %72 = vector.extract_strided_slice %9 {offsets = [15, 256], sizes = [1, 256], strides = [1, 1]} : vector<16x512xf32> to vector<1x256xf32>
    %c1_49 = arith.constant 1 : index
    %c3840_50 = arith.constant 3840 : index
    %73 = vector.load %arg5[%c1_49, %c3840_50] : memref<8x4096xf32, #tpu.memory_space<vmem>>, vector<1x256xf32>
    tpu.vector_store %arg5[%c1_49, %c3840_50], %72 {strides = array<i32>} : memref<8x4096xf32, #tpu.memory_space<vmem>>, vector<1x256xf32>,
    %c0_51 = arith.constant 0 : index
    %c0_52 = arith.constant 0 : index
    %74 = vector.load %arg5[%c0_51, %c0_52] : memref<8x4096xf32, #tpu.memory_space<vmem>>, vector<8x4096xf32>
    %c0_53 = arith.constant 0 : index
    %c0_54 = arith.constant 0 : index
    %75 = vector.load %arg2[%c0_53, %c0_54] : memref<10x4096xf32, #tpu.memory_space<vmem>>, vector<10x4096xf32>
    %cst_55 = arith.constant dense<0.000000e+00> : vector<8x10xf32>
    %76 = tpu.matmul %74, %75, %cst_55 {dimension_numbers = #tpu.dot_dimension_numbers<[1], [1], [0], [0], [0, 0, 1, 0], [], []>} : vector<8x4096xf32>, vector<10x4096xf32>, vector<8x10xf32> -> vector<8x10xf32>
    %c0_56 = arith.constant 0 : index
    %c0_57 = arith.constant 0 : index
    %77 = vector.load %arg3[%c0_56, %c0_57] : memref<1x10xf32, #tpu.memory_space<vmem>>, vector<1x10xf32>
    %78 = vector.broadcast %77 : vector<1x10xf32> to vector<8x10xf32>
    %79 = arith.addf %76, %78 : vector<8x10xf32>
    %c0_58 = arith.constant 0 : index
    %c0_59 = arith.constant 0 : index
    %80 = vector.load %arg4[%c0_58, %c0_59] : memref<8x128xf32, #tpu.memory_space<vmem>>, vector<8x10xf32>
    tpu.vector_store %arg4[%c0_58, %c0_59], %79 {strides = array<i32>} : memref<8x128xf32, #tpu.memory_space<vmem>>, vector<8x10xf32>,
    return
  }
}

</mosaic_0001>

<bundles_post_ra>
// kernel: testnet_forward.1
= control target key start
LH: loop header
LB: loop body
LE: loop exit
PB: predicated region body
PF: predicated region fallthrough
CT: control target
= control target key end

     0   :  { %vm121_vm0 = vcmask 130048   ;;  %vm376_vm1 = vcmask 1040384   ;;  %vm1373_vm3 = vcmask 80896   ;;  %s2004_s0 = inlined_call_operand.vmem [shape: bf16[16,2048], index: 0, kind: input, shape index: {}]   ;;  %s2005_s1 = inlined_call_operand.vmem [shape: bf16[16,16], index: 1, kind: input, shape index: {}]   ;;  %s2006_s2 = inlined_call_operand.vmem [shape: f32[10,4096], index: 2, kind: input, shape index: {}]   ;;  %s2007_s3 = inlined_call_operand.vmem [shape: f32[1,10], index: 3, kind: input, shape index: {}]   ;;  %s2008_s4 = inlined_call_operand.vmem [shape: f32[8,128], index: 4, kind: output, shape index: {}]  }
   0x1   :  { %v1385_v0 = vld [vmem:[%s2004_s0] sm:$0xf]  ;;  %v1464_v2 = vld [vmem:[%s2004_s0 + $0x4] sm:$0xf]  ;;  %v1465_v5 = vld [vmem:[%s2004_s0 + $0xc] sm:$0xf] }
   0x2   :  { %v1472_v1 = vld [vmem:[%s2004_s0 + $0x3c] sm:$0xf0]  ;;  %v1387_v4 = vld [vmem:[%s2004_s0 + $0x40] sm:$0xf0]  ;;  %v1395_v6 = vld [vmem:[%s2004_s0 + $0x48] sm:$0xf0] }
   0x3   :  { %v1386_v3 = vor.u32 %v1472_v1, %v1385_v0  ;;  %v1390_v7 = vor.u32 %v1464_v2, %v1387_v4  ;;  %v1398_v8 = vor.u32 %v1465_v5, %v1395_v6  ;;  %v1393_v9 = vld [vmem:[%s2004_s0 + $0x8] sm:$0xf]  ;;  %v1533_v11 = vld [vmem:[%s2005_s1] sm:$0xff]  ;;  %v1401_v13 = vld [vmem:[%s2004_s0 + $0x10] sm:$0xf] }
   0x4   :  { %v1473_v10 = vld [vmem:[%s2004_s0 + $0x44] sm:$0xf0]  ;;  %v1474_v14 = vld [vmem:[%s2004_s0 + $0x4c] sm:$0xf0]  ;;  %v1466_v15 = vld [vmem:[%s2004_s0 + $0x14] sm:$0xf] }
   0x5   :  { %132 = vmatpush.bf16.msra.mxu0 %v1386_v3  ;;  %v1394_v12 = vor.u32 %v1473_v10, %v1393_v9  ;;  %146 = vmatpush.bf16.msra.mxu1 %v1390_v7  ;;  %v1402_v16 = vor.u32 %v1474_v14, %v1401_v13  ;;  %v1403_v17 = vld [vmem:[%s2004_s0 + $0x50] sm:$0xf0]  ;;  %v1467_v18 = vld [vmem:[%s2004_s0 + $0x1c] sm:$0xf]  ;;  %v1409_v22 = vld [vmem:[%s2004_s0 + $0x18] sm:$0xf] }
   0x6   :  { %174 = vmatpush.bf16.msra.mxu3 %v1398_v8  ;;  %v1411_v19 = vld [vmem:[%s2004_s0 + $0x58] sm:$0xf0]  ;;  %v1406_v20 = vor.u32 %v1466_v15, %v1403_v17  ;;  %v1475_v23 = vld [vmem:[%s2004_s0 + $0x54] sm:$0xf0]  ;;  %v1417_v24 = vld [vmem:[%s2004_s0 + $0x20] sm:$0xf]  ;;  %v379_v17 = vlaneseq }
   0x7   :  { %160 = vmatpush.bf16.msra.mxu2 %v1394_v12  ;;  %v1414_v21 = vor.u32 %v1467_v18, %v1411_v19  ;;  %v1410_v25 = vor.u32 %v1475_v23, %v1409_v22  ;;  %v1476_v26 = vld [vmem:[%s2004_s0 + $0x5c] sm:$0xf0]  ;;  %v1468_v27 = vld [vmem:[%s2004_s0 + $0x24] sm:$0xf]  ;;  %v1469_v31 = vld [vmem:[%s2004_s0 + $0x2c] sm:$0xf] }
   0x8   :  { %1447 = vmatmul.msk.bf16.vlgmr.msra.gmra.mxu0 %vm121_vm0, %v1533_v11  ;;  %v1419_v28 = vld [vmem:[%s2004_s0 + $0x60] sm:$0xf0]  ;;  %1448 = vmatmul.msk.bf16.vlgmr.msra.gmra.mxu1 %vm121_vm0, %v1533_v11  ;;  %v1418_v29 = vor.u32 %v1476_v26, %v1417_v24  ;;  %v1427_v32 = vld [vmem:[%s2004_s0 + $0x68] sm:$0xf0]  ;;  %v1425_v33 = vld [vmem:[%s2004_s0 + $0x28] sm:$0xf] }
   0x9   :  { %1450 = vmatmul.msk.bf16.vlgmr.msra.gmra.mxu3 %vm121_vm0, %v1533_v11  ;;  %v1422_v30 = vor.u32 %v1468_v27, %v1419_v28  ;;  %188 = vmatpush.bf16.msrb.mxu0 %v1402_v16  ;;  %v1430_v34 = vor.u32 %v1469_v31, %v1427_v32  ;;  %v1477_v35 = vld [vmem:[%s2004_s0 + $0x64] sm:$0xf0]  ;;  %v1433_v37 = vld [vmem:[%s2004_s0 + $0x30] sm:$0xf]  ;;  %v1470_v39 = vld [vmem:[%s2004_s0 + $0x34] sm:$0xf] }
   0xa   :  { %202 = vmatpush.bf16.msrb.mxu1 %v1406_v20  ;;  %1449 = vmatmul.msk.bf16.vlgmr.msra.gmra.mxu2 %vm121_vm0, %v1533_v11  ;;  %v1426_v36 = vor.u32 %v1477_v35, %v1425_v33  ;;  %v1478_v38 = vld [vmem:[%s2004_s0 + $0x6c] sm:$0xf0]  ;;  %v1435_v40 = vld [vmem:[%s2004_s0 + $0x70] sm:$0xf0]  ;;  %v1471_v41 = vld [vmem:[%s2004_s0 + $0x3c] sm:$0xf] }
   0xb   :  { %230 = vmatpush.bf16.msrb.mxu3 %v1414_v21  ;;  %216 = vmatpush.bf16.msrb.mxu2 %v1410_v25  ;;  %v1443_v42 = vld [vmem:[%s2004_s0 + $0x78] sm:$0xf0]  ;;  %v1441_v43 = vld [vmem:[%s2004_s0 + $0x38] sm:$0xf]  ;;  %v1434_v45 = vor.u32 %v1478_v38, %v1433_v37  ;;  %v1438_v46 = vor.u32 %v1470_v39, %v1435_v40  ;;  %v697_v8 = vld [vmem:[%s2006_s2 + $0x100] sm:$0x3] }
   0xc   :  { %v1479_v44 = vld [vmem:[%s2004_s0 + $0x74] sm:$0xf0]  ;;  %v1446_v47 = vor.u32 %v1471_v41, %v1443_v42  ;;  %v698_v9 = vld [vmem:[%s2006_s2 + $0x108] sm:$0x3]  ;;  %v665_v19 = vld [vmem:[%s2006_s2] sm:$0xff]  ;;  %vm1668_vm2 = vcmp.lt.s32.totalorder %v379_v17, 256 }
   0xd   :  { %244 = vmatpush.bf16.msra.mxu0 %v1418_v29  ;;  %v1442_v48 = vor.u32 %v1479_v44, %v1441_v43  ;;  %v666_v20 = vld [vmem:[%s2006_s2 + $0x8] sm:$0xff]  ;;  %v672_v17 = vld [vmem:[%s2006_s2 + $0x38] sm:$0xff] }
   0xe   :  { %258 = vmatpush.bf16.msra.mxu1 %v1422_v30 }
   0xf   :  { %286 = vmatpush.bf16.msra.mxu3 %v1430_v34  ;;  %272 = vmatpush.bf16.msra.mxu2 %v1426_v36 }
  0x18   :  { %1451 = vmatmul.msk.bf16.vlgmr.msrb.gmra.mxu0 %vm121_vm0, %v1533_v11  ;;  %1452 = vmatmul.msk.bf16.vlgmr.msrb.gmra.mxu1 %vm121_vm0, %v1533_v11 }
  0x19   :  { %1454 = vmatmul.msk.bf16.vlgmr.msrb.gmra.mxu3 %vm121_vm0, %v1533_v11  ;;  %300 = vmatpush.bf16.msrb.mxu0 %v1434_v45 }
  0x1a   :  { %314 = vmatpush.bf16.msrb.mxu1 %v1438_v46  ;;  %1453 = vmatmul.msk.bf16.vlgmr.msrb.gmra.mxu2 %vm121_vm0, %v1533_v11 }
  0x1b   :  { %342 = vmatpush.bf16.msrb.mxu3 %v1446_v47  ;;  %328 = vmatpush.bf16.msrb.mxu2 %v1442_v48 }
  0x28   :  { %1455 = vmatmul.msk.bf16.vlgmr.msra.gmra.mxu0 %vm121_vm0, %v1533_v11  ;;  %1456 = vmatmul.msk.bf16.vlgmr.msra.gmra.mxu1 %vm121_vm0, %v1533_v11 }
  0x29   :  { %1458 = vmatmul.msk.bf16.vlgmr.msra.gmra.mxu3 %vm121_vm0, %v1533_v11  ;;  %747 = vmatpush.xpose.msra.mxu0 %v697_v8  ;;  %v668_v8 = vld [vmem:[%s2006_s2 + $0x18] sm:$0xff] }
  0x2a   :  { %1457 = vmatmul.msk.bf16.vlgmr.msra.gmra.mxu2 %vm121_vm0, %v1533_v11  ;;  %767 = vmatpush.xpose.msra.mxu1 %v698_v9  ;;  %v701_v9 = vld [vmem:[%s2006_s2 + $0x120] sm:$0x3] }
  0x2d   :  { %748 = vmatpush.xpose.msra.mxu0 %v665_v19  ;;  %v705_v19 = vld [vmem:[%s2006_s2 + $0x140] sm:$0x3] }
  0x2e   :  { %768 = vmatpush.xpose.msra.mxu1 %v666_v20  ;;  %v706_v20 = vld [vmem:[%s2006_s2 + $0x148] sm:$0x3] }
  0x38   :  { %1459 = vmatmul.msk.bf16.vlgmr.msrb.gmra.mxu0 %vm121_vm0, %v1533_v11  ;;  %1460 = vmatmul.msk.bf16.vlgmr.msrb.gmra.mxu1 %vm121_vm0, %v1533_v11 }
  0x39   :  { %1462 = vmatmul.msk.bf16.vlgmr.msrb.gmra.mxu3 %vm121_vm0, %v1533_v11  ;;  %827 = vmatpush.xpose.msrb.mxu0 %v701_v9  ;;  %v721_v9 = vld [vmem:[%s2006_s2 + $0x1c0] sm:$0x3] }
  0x3a   :  { %1461 = vmatmul.msk.bf16.vlgmr.msrb.gmra.mxu2 %vm121_vm0, %v1533_v11 }
  0x85   :  { %v134_v49 = vpop.f32.mrf.mxu0  ;;  %v148_v50 = vpop.f32.mrf.mxu1 }
  0x8c   :  { %v176_v51 = vpop.f32.mrf.mxu3 }
  0x8d   :  { %v1639_v52 = vpop.f32.mrf.mxu0  ;;  %v150_v53 = vpop.f32.mrf.mxu1 }
  0x8e   :  { %v162_v54 = vpop.f32.mrf.mxu2 }
  0x94   :  { %v1641_v55 = vpop.f32.mrf.mxu3 }
  0x95   :  { %v190_v56 = vpop.f32.mrf.mxu0  ;;  %v204_v58 = vpop.f32.mrf.mxu1 }
  0x96   :  { %v1643_v57 = vpop.f32.mrf.mxu2  ;;  %v349_v11 = vmax.f32 %v134_v49, %v190_v56  ;;  %v350_v15 = vmax.f32 %v148_v50, %v204_v58 }
  0x9c   :  { %v232_v59 = vpop.f32.mrf.mxu3 }
  0x9d   :  { %v192_v60 = vpop.f32.mrf.mxu0  ;;  %v206_v61 = vpop.f32.mrf.mxu1  ;;  %v352_v22 = vmax.f32 %v176_v51, %v232_v59 }
  0x9e   :  { %v218_v62 = vpop.f32.mrf.mxu2  ;;  %v354_v30 = vmax.f32 %v150_v53, %v206_v61  ;;  %v353_v37 = vmax.f32 %v1639_v52, %v192_v60 }
  0x9f   :  { %v351_v26 = vmax.f32 %v162_v54, %v218_v62 }
  0xa4   :  { %v1645_v63 = vpop.f32.mrf.mxu3 }
  0xa5   :  { %v246_v0 = vpop.f32.mrf.mxu0  ;;  %v260_v2 = vpop.f32.mrf.mxu1  ;;  %v356_v42 = vmax.f32 %v1641_v55, %v1645_v63 }
  0xa6   :  { %v1647_v1 = vpop.f32.mrf.mxu2 }
  0xa7   :  { %v355_v47 = vmax.f32 %v1643_v57, %v1647_v1 }
  0xac   :  { %v288_v3 = vpop.f32.mrf.mxu3 }
  0xad   :  { %v248_v4 = vpop.f32.mrf.mxu0  ;;  %v262_v5 = vpop.f32.mrf.mxu1 }
  0xae   :  { %v274_v6 = vpop.f32.mrf.mxu2 }
  0xb4   :  { %v290_v7 = vpop.f32.mrf.mxu3 }
  0xb5   :  { %v302_v10 = vpop.f32.mrf.mxu0  ;;  %v316_v14 = vpop.f32.mrf.mxu1 }
  0xb6   :  { %v276_v12 = vpop.f32.mrf.mxu2  ;;  %v357_v13 = vmax.f32 %v246_v0, %v302_v10  ;;  %v358_v16 = vmax.f32 %v260_v2, %v316_v14  ;;  %v702_v10 = vld [vmem:[%s2006_s2 + $0x128] sm:$0x3]  ;;  %v703_v14 = vld [vmem:[%s2006_s2 + $0x130] sm:$0x3] }
  0xb7   :  { %847 = vmatpush.xpose.msrb.mxu1 %v702_v10  ;;  %v722_v10 = vld [vmem:[%s2006_s2 + $0x1c8] sm:$0x3] }
  0xb8   :  { %v1655_v18 = vmax.f32 %v349_v11, %v357_v13  ;;  %v1663_v21 = vmax.f32 %v350_v15, %v358_v16  ;;  %v670_v13 = vld [vmem:[%s2006_s2 + $0x28] sm:$0xff]  ;;  %v704_v15 = vld [vmem:[%s2006_s2 + $0x138] sm:$0x3]  ;;  %v671_v16 = vld [vmem:[%s2006_s2 + $0x30] sm:$0xff] }
  0xba   :  { %385 = vst [vmem:[#allocation1] sm:$0xff] %v1655_v18  ;;  %v375_v23 = vrot.slane %v1663_v21, 7 }
  0xbb   :  { %386 = vst [vmem:[#allocation1 + $0x9] sm:$0xff] %v1663_v21  ;;  %848 = vmatpush.xpose.msrb.mxu1 %v670_v13  ;;  %v689_v13 = vld [vmem:[%s2006_s2 + $0xc0] sm:$0xff] }
  0xbc   :  { %v344_v25 = vpop.f32.mrf.mxu3  ;;  %v377_v29 = vsel %vm376_vm1, %v1655_v18, %v375_v23 }
  0xbd   :  { %v360_v27 = vmax.f32 %v288_v3, %v344_v25  ;;  %v304_v28 = vpop.f32.mrf.mxu0  ;;  %v318_v31 = vpop.f32.mrf.mxu1  ;;  %383 = vst.msk [vmem:[#allocation2] ss:$8 sm:$0x3] %vm1668_vm2, %v377_v29 }
  0xbe   :  { %v330_v32 = vpop.f32.mrf.mxu2  ;;  %v361_v34 = vmax.f32 %v248_v4, %v304_v28  ;;  %v362_v35 = vmax.f32 %v262_v5, %v318_v31  ;;  %v699_v4 = vld [vmem:[%s2006_s2 + $0x110] sm:$0x3]  ;;  %v700_v5 = vld [vmem:[%s2006_s2 + $0x118] sm:$0x3] }
  0xbf   :  { %v1676_v33 = vmax.f32 %v352_v22, %v360_v27  ;;  %v359_v36 = vmax.f32 %v274_v6, %v330_v32  ;;  %787 = vmatpush.xpose.msra.mxu2 %v699_v4  ;;  %807 = vmatpush.xpose.msra.mxu3 %v700_v5  ;;  %v674_v22 = vld [vmem:[%s2006_s2 + $0x48] sm:$0xff]  ;;  %v708_v27 = vld [vmem:[%s2006_s2 + $0x158] sm:$0x3] }
  0xc0   :  { %v1680_v39 = vmax.f32 %v354_v30, %v362_v35  ;;  %v1687_v43 = vmax.f32 %v353_v37, %v361_v34  ;;  %v675_v30 = vld [vmem:[%s2006_s2 + $0x50] sm:$0xff]  ;;  %v676_v31 = vld [vmem:[%s2006_s2 + $0x58] sm:$0xff]  ;;  %v709_v34 = vld [vmem:[%s2006_s2 + $0x160] sm:$0x3] }
  0xc1   :  { %v507_v38 = vrot.slane %v1676_v33, 7  ;;  %v1682_v40 = vmax.f32 %v351_v26, %v359_v36  ;;  %v707_v26 = vld [vmem:[%s2006_s2 + $0x150] sm:$0x3]  ;;  %v710_v35 = vld [vmem:[%s2006_s2 + $0x168] sm:$0x3] }
  0xc2   :  { %v388_v41 = vld [vmem:[#allocation1 + $0x1] ss:$9 sm:$0xff]  ;;  %v443_v44 = vrot.slane %v1680_v39, 7 }
  0xc3   :  { %393 = vst [vmem:[#allocation1] sm:$0xff] %v1655_v18  ;;  %v508_v45 = vsel %vm376_vm1, %v1682_v40, %v507_v38  ;;  %808 = vmatpush.xpose.msra.mxu3 %v668_v8  ;;  %v677_v38 = vld [vmem:[%s2006_s2 + $0x60] sm:$0xff]  ;;  %v720_v8 = vld [vmem:[%s2006_s2 + $0x1b8] sm:$0x3] }
  0xc4   :  { %394 = vst [vmem:[#allocation1 + $0x9] sm:$0xff] %v1663_v21  ;;  %v346_v46 = vpop.f32.mrf.mxu3  ;;  %v444_v49 = vsel %vm376_vm1, %v1687_v43, %v443_v44 }
  0xc5   :  { %v364_v48 = vmax.f32 %v290_v7, %v346_v46  ;;  %511 = vst.msk [vmem:[#allocation2 + $0x1] ss:$8 sm:$0x3] %vm1668_vm2, %v508_v45  ;;  %v667_v7 = vld [vmem:[%s2006_s2 + $0x10] sm:$0xff] }
  0xc6   :  { %v332_v50 = vpop.f32.mrf.mxu2  ;;  %391 = vst.msk [vmem:[#allocation2 + $0x10] ss:$8 sm:$0x3] %vm1668_vm2, %v388_v41  ;;  %788 = vmatpush.xpose.msra.mxu2 %v667_v7  ;;  %v711_v41 = vld [vmem:[%s2006_s2 + $0x170] sm:$0x3] }
  0xc7   :  { %v1701_v51 = vmax.f32 %v356_v42, %v364_v48  ;;  %v363_v52 = vmax.f32 %v276_v12, %v332_v50  ;;  %447 = vst.msk [vmem:[#allocation2 + $0x80] ss:$8 sm:$0x3] %vm1668_vm2, %v444_v49  ;;  %v669_v12 = vld [vmem:[%s2006_s2 + $0x20] sm:$0xff]  ;;  %887 = vmatpush.xpose.msrb.mxu3 %v704_v15  ;;  %v712_v42 = vld [vmem:[%s2006_s2 + $0x178] sm:$0x3] }
  0xc8   :  { %828 = vmatpush.xpose.msrb.mxu0 %v669_v12  ;;  %v679_v46 = vld [vmem:[%s2006_s2 + $0x70] sm:$0xff]  ;;  %v713_v48 = vld [vmem:[%s2006_s2 + $0x180] sm:$0x3]  ;;  %v714_v49 = vld [vmem:[%s2006_s2 + $0x188] sm:$0x3] }
  0xc9   :  { %v571_v53 = vrot.slane %v1701_v51, 7  ;;  %v1706_v54 = vmax.f32 %v355_v47, %v363_v52  ;;  %v680_v47 = vld [vmem:[%s2006_s2 + $0x78] sm:$0xff]  ;;  %v719_v7 = vld [vmem:[%s2006_s2 + $0x1b0] sm:$0x3] }
  0xca   :  { %867 = vmatpush.xpose.msrb.mxu2 %v703_v14  ;;  %v690_v14 = vld [vmem:[%s2006_s2 + $0xc8] sm:$0xff] }
  0xcb   :  { %v396_v55 = vld [vmem:[#allocation1 + $0x2] ss:$9 sm:$0xff]  ;;  %v572_v56 = vsel %vm376_vm1, %v1706_v54, %v571_v53  ;;  %888 = vmatpush.xpose.msrb.mxu3 %v672_v17 }
  0xcc   :  { %401 = vst [vmem:[#allocation1] sm:$0xff] %v1655_v18  ;;  %v633_v57 = vld [vmem:[#allocation2] sm:$0xff]  ;;  %v634_v58 = vld [vmem:[#allocation2 + $0x8] sm:$0xff]  ;;  %v688_v17 = vld [vmem:[%s2006_s2 + $0xb8] sm:$0xff] }
  0xcd   :  { %402 = vst [vmem:[#allocation1 + $0x9] sm:$0xff] %v1663_v21  ;;  %749 = vmatmul.f32.vlgmr.msra.gmra.mxu0 %v633_v57  ;;  %769 = vmatmul.f32.vlgmr.msra.gmra.mxu1 %v634_v58  ;;  %v715_v57 = vld [vmem:[%s2006_s2 + $0x190] sm:$0x3]  ;;  %v716_v58 = vld [vmem:[%s2006_s2 + $0x198] sm:$0x3] }
  0xce   :  { %399 = vst.msk [vmem:[#allocation2 + $0x20] ss:$8 sm:$0x3] %vm1668_vm2, %v396_v55  ;;  %868 = vmatpush.xpose.msrb.mxu2 %v671_v16  ;;  %907 = vmatpush.xpose.msra.mxu0 %v705_v19  ;;  %v681_v55 = vld [vmem:[%s2006_s2 + $0x80] sm:$0xff]  ;;  %v687_v16 = vld [vmem:[%s2006_s2 + $0xb0] sm:$0xff] }
  0xcf   :  { %575 = vst.msk [vmem:[#allocation2 + $0x81] ss:$8 sm:$0x3] %vm1668_vm2, %v572_v56  ;;  %927 = vmatpush.xpose.msra.mxu1 %v706_v20  ;;  %v682_v56 = vld [vmem:[%s2006_s2 + $0x88] sm:$0xff]  ;;  %v724_v19 = vld [vmem:[%s2006_s2 + $0x1d8] sm:$0x3] }
  0xd3   :  { %928 = vmatpush.xpose.msra.mxu1 %v674_v22 }
  0xd4   :  { %v404_v59 = vld [vmem:[#allocation1 + $0x3] ss:$9 sm:$0xff] }
  0xd5   :  { %409 = vst [vmem:[#allocation1] sm:$0xff] %v1655_v18 }
  0xd6   :  { %410 = vst [vmem:[#allocation1 + $0x9] sm:$0xff] %v1663_v21  ;;  %v649_v5 = vld [vmem:[#allocation2 + $0x80] sm:$0xff] }
  0xd7   :  { %407 = vst.msk [vmem:[#allocation2 + $0x30] ss:$8 sm:$0x3] %vm1668_vm2, %v404_v59 }
  0xdd   :  { %v412_v60 = vld [vmem:[#allocation1 + $0x4] ss:$9 sm:$0xff] }
  0xde   :  { %417 = vst [vmem:[#allocation1] sm:$0xff] %v1655_v18 }
  0xdf   :  { %418 = vst [vmem:[#allocation1 + $0x9] sm:$0xff] %v1663_v21 }
  0xe0   :  { %415 = vst.msk [vmem:[#allocation2 + $0x40] ss:$8 sm:$0x3] %vm1668_vm2, %v412_v60 }
  0xe6   :  { %v420_v61 = vld [vmem:[#allocation1 + $0x5] ss:$9 sm:$0xff] }
  0xe7   :  { %425 = vst [vmem:[#allocation1] sm:$0xff] %v1655_v18 }
  0xe8   :  { %426 = vst [vmem:[#allocation1 + $0x9] sm:$0xff] %v1663_v21 }
  0xe9   :  { %423 = vst.msk [vmem:[#allocation2 + $0x50] ss:$8 sm:$0x3] %vm1668_vm2, %v420_v61 }
  0xef   :  { %v428_v62 = vld [vmem:[#allocation1 + $0x6] ss:$9 sm:$0xff] }
  0xf0   :  { %433 = vst [vmem:[#allocation1] sm:$0xff] %v1655_v18 }
  0xf1   :  { %434 = vst [vmem:[#allocation1 + $0x9] sm:$0xff] %v1663_v21  ;;  %v673_v21 = vld [vmem:[%s2006_s2 + $0x40] sm:$0xff] }
  0xf2   :  { %431 = vst.msk [vmem:[#allocation2 + $0x60] ss:$8 sm:$0x3] %vm1668_vm2, %v428_v62  ;;  %908 = vmatpush.xpose.msra.mxu0 %v673_v21  ;;  %v683_v62 = vld [vmem:[%s2006_s2 + $0x90] sm:$0xff] }
  0xf8   :  { %v436_v63 = vld [vmem:[#allocation1 + $0x7] ss:$9 sm:$0xff] }
  0xf9   :  { %449 = vst [vmem:[#allocation1] sm:$0xff] %v1687_v43 }
  0xfa   :  { %450 = vst [vmem:[#allocation1 + $0x9] sm:$0xff] %v1680_v39 }
  0xfb   :  { %439 = vst.msk [vmem:[#allocation2 + $0x70] ss:$8 sm:$0x3] %vm1668_vm2, %v436_v63  ;;  %v684_v63 = vld [vmem:[%s2006_s2 + $0x98] sm:$0xff] }
 0x101   :  { %v452_v0 = vld [vmem:[#allocation1 + $0x1] ss:$9 sm:$0xff] }
 0x102   :  { %457 = vst [vmem:[#allocation1] sm:$0xff] %v1687_v43 }
 0x103   :  { %458 = vst [vmem:[#allocation1 + $0x9] sm:$0xff] %v1680_v39 }
 0x104   :  { %455 = vst.msk [vmem:[#allocation2 + $0x90] ss:$8 sm:$0x3] %vm1668_vm2, %v452_v0  ;;  %v717_v0 = vld [vmem:[%s2006_s2 + $0x1a0] sm:$0x3] }
 0x10a   :  { %v460_v1 = vld [vmem:[#allocation1 + $0x2] ss:$9 sm:$0xff] }
 0x10b   :  { %465 = vst [vmem:[#allocation1] sm:$0xff] %v1687_v43 }
 0x10c   :  { %466 = vst [vmem:[#allocation1 + $0x9] sm:$0xff] %v1680_v39 }
 0x10d   :  { %463 = vst.msk [vmem:[#allocation2 + $0xa0] ss:$8 sm:$0x3] %vm1668_vm2, %v460_v1  ;;  %v718_v1 = vld [vmem:[%s2006_s2 + $0x1a8] sm:$0x3] }
 0x113   :  { %v468_v2 = vld [vmem:[#allocation1 + $0x3] ss:$9 sm:$0xff] }
 0x114   :  { %473 = vst [vmem:[#allocation1] sm:$0xff] %v1687_v43 }
 0x115   :  { %474 = vst [vmem:[#allocation1 + $0x9] sm:$0xff] %v1680_v39 }
 0x116   :  { %471 = vst.msk [vmem:[#allocation2 + $0xb0] ss:$8 sm:$0x3] %vm1668_vm2, %v468_v2 }
 0x11c   :  { %v476_v3 = vld [vmem:[#allocation1 + $0x4] ss:$9 sm:$0xff] }
 0x11d   :  { %481 = vst [vmem:[#allocation1] sm:$0xff] %v1687_v43 }
 0x11e   :  { %482 = vst [vmem:[#allocation1 + $0x9] sm:$0xff] %v1680_v39 }
 0x11f   :  { %479 = vst.msk [vmem:[#allocation2 + $0xc0] ss:$8 sm:$0x3] %vm1668_vm2, %v476_v3 }
 0x125   :  { %v484_v6 = vld [vmem:[#allocation1 + $0x5] ss:$9 sm:$0xff] }
 0x126   :  { %489 = vst [vmem:[#allocation1] sm:$0xff] %v1687_v43 }
 0x127   :  { %490 = vst [vmem:[#allocation1 + $0x9] sm:$0xff] %v1680_v39 }
 0x128   :  { %487 = vst.msk [vmem:[#allocation2 + $0xd0] ss:$8 sm:$0x3] %vm1668_vm2, %v484_v6  ;;  %v650_v6 = vld [vmem:[#allocation2 + $0x88] sm:$0xff] }
 0x12e   :  { %v492_v11 = vld [vmem:[#allocation1 + $0x6] ss:$9 sm:$0xff] }
 0x12f   :  { %497 = vst [vmem:[#allocation1] sm:$0xff] %v1687_v43 }
 0x130   :  { %498 = vst [vmem:[#allocation1 + $0x9] sm:$0xff] %v1680_v39  ;;  %v678_v39 = vld [vmem:[%s2006_s2 + $0x68] sm:$0xff] }
 0x131   :  { %495 = vst.msk [vmem:[#allocation2 + $0xe0] ss:$8 sm:$0x3] %vm1668_vm2, %v492_v11 }
 0x137   :  { %v500_v18 = vld [vmem:[#allocation1 + $0x7] ss:$9 sm:$0xff] }
 0x138   :  { %514 = vst [vmem:[#allocation1 + $0x9] sm:$0xff] %v1676_v33 }
 0x139   :  { %513 = vst [vmem:[#allocation1] sm:$0xff] %v1682_v40 }
 0x13a   :  { %503 = vst.msk [vmem:[#allocation2 + $0xf0] ss:$8 sm:$0x3] %vm1668_vm2, %v500_v18  ;;  %v723_v18 = vld [vmem:[%s2006_s2 + $0x1d0] sm:$0x3] }
 0x140   :  { %v516_v23 = vld [vmem:[#allocation1 + $0x1] ss:$9 sm:$0xff] }
 0x141   :  { %521 = vst [vmem:[#allocation1] sm:$0xff] %v1682_v40 }
 0x142   :  { %522 = vst [vmem:[#allocation1 + $0x9] sm:$0xff] %v1676_v33 }
 0x143   :  { %519 = vst.msk [vmem:[#allocation2 + $0x11] ss:$8 sm:$0x3] %vm1668_vm2, %v516_v23  ;;  %v691_v23 = vld [vmem:[%s2006_s2 + $0xd0] sm:$0xff] }
 0x149   :  { %v524_v25 = vld [vmem:[#allocation1 + $0x2] ss:$9 sm:$0xff] }
 0x14a   :  { %529 = vst [vmem:[#allocation1] sm:$0xff] %v1682_v40  ;;  %v635_v28 = vld [vmem:[#allocation2 + $0x10] sm:$0xff]  ;;  %v636_v29 = vld [vmem:[#allocation2 + $0x18] sm:$0xff] }
 0x14b   :  { %530 = vst [vmem:[#allocation1 + $0x9] sm:$0xff] %v1676_v33  ;;  %789 = vmatmul.f32.vlgmr.msra.gmra.mxu2 %v635_v28  ;;  %809 = vmatmul.f32.vlgmr.msra.gmra.mxu3 %v636_v29 }
 0x14c   :  { %527 = vst.msk [vmem:[#allocation2 + $0x21] ss:$8 sm:$0x3] %vm1668_vm2, %v524_v25  ;;  %947 = vmatpush.xpose.msra.mxu2 %v707_v26  ;;  %967 = vmatpush.xpose.msra.mxu3 %v708_v27  ;;  %v692_v25 = vld [vmem:[%s2006_s2 + $0xd8] sm:$0xff]  ;;  %v725_v26 = vld [vmem:[%s2006_s2 + $0x1e0] sm:$0x3] }
 0x14d   :  { %v726_v27 = vld [vmem:[%s2006_s2 + $0x1e8] sm:$0x3] }
 0x150   :  { %948 = vmatpush.xpose.msra.mxu2 %v675_v30  ;;  %968 = vmatpush.xpose.msra.mxu3 %v676_v31  ;;  %v693_v31 = vld [vmem:[%s2006_s2 + $0xe0] sm:$0xff] }
 0x152   :  { %v532_v32 = vld [vmem:[#allocation1 + $0x3] ss:$9 sm:$0xff] }
 0x153   :  { %v637_v36 = vld [vmem:[#allocation2 + $0x20] sm:$0xff]  ;;  %v638_v37 = vld [vmem:[#allocation2 + $0x28] sm:$0xff]  ;;  %535 = vst.msk [vmem:[#allocation2 + $0x31] ss:$8 sm:$0x3] %vm1668_vm2, %v532_v32 }
 0x154   :  { %829 = vmatmul.f32.vlgmr.msrb.gmra.mxu0 %v637_v36  ;;  %849 = vmatmul.f32.vlgmr.msrb.gmra.mxu1 %v638_v37  ;;  %537 = vst [vmem:[#allocation1] sm:$0xff] %v1682_v40  ;;  %v694_v32 = vld [vmem:[%s2006_s2 + $0xe8] sm:$0xff] }
 0x155   :  { %538 = vst [vmem:[#allocation1 + $0x9] sm:$0xff] %v1676_v33  ;;  %987 = vmatpush.xpose.msrb.mxu0 %v709_v34  ;;  %1007 = vmatpush.xpose.msrb.mxu1 %v710_v35  ;;  %v727_v34 = vld [vmem:[%s2006_s2 + $0x1f0] sm:$0x3]  ;;  %v728_v35 = vld [vmem:[%s2006_s2 + $0x1f8] sm:$0x3] }
 0x159   :  { %988 = vmatpush.xpose.msrb.mxu0 %v677_v38  ;;  %1008 = vmatpush.xpose.msrb.mxu1 %v678_v39  ;;  %v695_v39 = vld [vmem:[%s2006_s2 + $0xf0] sm:$0xff] }
 0x15a   :  { %v639_v43 = vld [vmem:[#allocation2 + $0x30] sm:$0xff]  ;;  %v640_v44 = vld [vmem:[#allocation2 + $0x38] sm:$0xff] }
 0x15b   :  { %869 = vmatmul.f32.vlgmr.msrb.gmra.mxu2 %v639_v43  ;;  %889 = vmatmul.f32.vlgmr.msrb.gmra.mxu3 %v640_v44 }
 0x15c   :  { %v540_v45 = vld [vmem:[#allocation1 + $0x4] ss:$9 sm:$0xff]  ;;  %1027 = vmatpush.xpose.msrb.mxu2 %v711_v41  ;;  %1047 = vmatpush.xpose.msrb.mxu3 %v712_v42 }
 0x15d   :  { %543 = vst.msk [vmem:[#allocation2 + $0x41] ss:$8 sm:$0x3] %vm1668_vm2, %v540_v45  ;;  %v696_v41 = vld [vmem:[%s2006_s2 + $0xf8] sm:$0xff] }
 0x15e   :  { %545 = vst [vmem:[#allocation1] sm:$0xff] %v1682_v40 }
 0x15f   :  { %546 = vst [vmem:[#allocation1 + $0x9] sm:$0xff] %v1676_v33 }
 0x160   :  { %1028 = vmatpush.xpose.msrb.mxu2 %v679_v46  ;;  %1048 = vmatpush.xpose.msrb.mxu3 %v680_v47 }
 0x164   :  { %v641_v50 = vld [vmem:[#allocation2 + $0x40] sm:$0xff]  ;;  %v642_v52 = vld [vmem:[#allocation2 + $0x48] sm:$0xff] }
 0x165   :  { %909 = vmatmul.f32.vlgmr.msra.gmra.mxu0 %v641_v50  ;;  %929 = vmatmul.f32.vlgmr.msra.gmra.mxu1 %v642_v52 }
 0x166   :  { %v548_v53 = vld [vmem:[#allocation1 + $0x5] ss:$9 sm:$0xff]  ;;  %1067 = vmatpush.xpose.msra.mxu0 %v713_v48  ;;  %1087 = vmatpush.xpose.msra.mxu1 %v714_v49 }
 0x167   :  { %551 = vst.msk [vmem:[#allocation2 + $0x51] ss:$8 sm:$0x3] %vm1668_vm2, %v548_v53 }
 0x168   :  { %553 = vst [vmem:[#allocation1] sm:$0xff] %v1682_v40 }
 0x169   :  { %554 = vst [vmem:[#allocation1 + $0x9] sm:$0xff] %v1676_v33 }
 0x16a   :  { %1068 = vmatpush.xpose.msra.mxu0 %v681_v55  ;;  %1088 = vmatpush.xpose.msra.mxu1 %v682_v56  ;;  %v1480_v55 = vld [vmem:[%s2007_s3] ss:$0 sm:$0xff]  ;;  %v750_v56 = vpop.f32.mrf.mxu0 }
 0x16e   :  { %v643_v59 = vld [vmem:[#allocation2 + $0x50] sm:$0xff]  ;;  %v644_v60 = vld [vmem:[#allocation2 + $0x58] sm:$0xff] }
 0x16f   :  { %949 = vmatmul.f32.vlgmr.msra.gmra.mxu2 %v643_v59  ;;  %969 = vmatmul.f32.vlgmr.msra.gmra.mxu3 %v644_v60 }
 0x170   :  { %v556_v61 = vld [vmem:[#allocation1 + $0x6] ss:$9 sm:$0xff]  ;;  %1107 = vmatpush.xpose.msra.mxu2 %v715_v57  ;;  %1127 = vmatpush.xpose.msra.mxu3 %v716_v58  ;;  %v770_v57 = vpop.f32.mrf.mxu1 }
 0x171   :  { %559 = vst.msk [vmem:[#allocation2 + $0x61] ss:$8 sm:$0x3] %vm1668_vm2, %v556_v61 }
 0x172   :  { %561 = vst [vmem:[#allocation1] sm:$0xff] %v1682_v40  ;;  %v686_v40 = vld [vmem:[%s2006_s2 + $0xa8] sm:$0xff] }
 0x173   :  { %562 = vst [vmem:[#allocation1 + $0x9] sm:$0xff] %v1676_v33  ;;  %v685_v33 = vld [vmem:[%s2006_s2 + $0xa0] sm:$0xff] }
 0x174   :  { %1108 = vmatpush.xpose.msra.mxu2 %v683_v62  ;;  %1128 = vmatpush.xpose.msra.mxu3 %v684_v63 }
 0x178   :  { %v645_v2 = vld [vmem:[#allocation2 + $0x60] sm:$0xff]  ;;  %v646_v3 = vld [vmem:[#allocation2 + $0x68] sm:$0xff] }
 0x179   :  { %989 = vmatmul.f32.vlgmr.msrb.gmra.mxu0 %v645_v2  ;;  %1009 = vmatmul.f32.vlgmr.msrb.gmra.mxu1 %v646_v3 }
 0x17a   :  { %v564_v4 = vld [vmem:[#allocation1 + $0x7] ss:$9 sm:$0xff]  ;;  %1147 = vmatpush.xpose.msrb.mxu0 %v717_v0  ;;  %1167 = vmatpush.xpose.msrb.mxu1 %v718_v1 }
 0x17b   :  { %567 = vst.msk [vmem:[#allocation2 + $0x71] ss:$8 sm:$0x3] %vm1668_vm2, %v564_v4 }
 0x17c   :  { %577 = vst [vmem:[#allocation1] sm:$0xff] %v1706_v54 }
 0x17d   :  { %578 = vst [vmem:[#allocation1 + $0x9] sm:$0xff] %v1701_v51 }
 0x17e   :  { %1148 = vmatpush.xpose.msrb.mxu0 %v685_v33  ;;  %1168 = vmatpush.xpose.msrb.mxu1 %v686_v40 }
 0x181   :  { %1069 = vmatmul.f32.vlgmr.msra.gmra.mxu0 %v649_v5  ;;  %1089 = vmatmul.f32.vlgmr.msra.gmra.mxu1 %v650_v6 }
 0x182   :  { %v647_v11 = vld [vmem:[#allocation2 + $0x70] sm:$0xff]  ;;  %v648_v12 = vld [vmem:[#allocation2 + $0x78] sm:$0xff]  ;;  %1227 = vmatpush.xpose.msra.mxu0 %v721_v9  ;;  %1247 = vmatpush.xpose.msra.mxu1 %v722_v10 }
 0x183   :  { %1029 = vmatmul.f32.vlgmr.msrb.gmra.mxu2 %v647_v11  ;;  %1049 = vmatmul.f32.vlgmr.msrb.gmra.mxu3 %v648_v12 }
 0x184   :  { %v580_v15 = vld [vmem:[#allocation1 + $0x1] ss:$9 sm:$0xff]  ;;  %1187 = vmatpush.xpose.msrb.mxu2 %v719_v7  ;;  %1207 = vmatpush.xpose.msrb.mxu3 %v720_v8 }
 0x185   :  { %583 = vst.msk [vmem:[#allocation2 + $0x91] ss:$8 sm:$0x3] %vm1668_vm2, %v580_v15 }
 0x186   :  { %585 = vst [vmem:[#allocation1] sm:$0xff] %v1706_v54  ;;  %1228 = vmatpush.xpose.msra.mxu0 %v689_v13  ;;  %1248 = vmatpush.xpose.msra.mxu1 %v690_v14 }
 0x187   :  { %586 = vst [vmem:[#allocation1 + $0x9] sm:$0xff] %v1701_v51 }
 0x188   :  { %1188 = vmatpush.xpose.msrb.mxu2 %v687_v16  ;;  %1208 = vmatpush.xpose.msrb.mxu3 %v688_v17 }
 0x18c   :  { %v651_v20 = vld [vmem:[#allocation2 + $0x90] sm:$0xff]  ;;  %v652_v21 = vld [vmem:[#allocation2 + $0x98] sm:$0xff] }
 0x18d   :  { %1109 = vmatmul.f32.vlgmr.msra.gmra.mxu2 %v651_v20  ;;  %1129 = vmatmul.f32.vlgmr.msra.gmra.mxu3 %v652_v21 }
 0x18e   :  { %v588_v22 = vld [vmem:[#allocation1 + $0x2] ss:$9 sm:$0xff]  ;;  %1267 = vmatpush.xpose.msra.mxu2 %v723_v18  ;;  %1287 = vmatpush.xpose.msra.mxu3 %v724_v19 }
 0x18f   :  { %591 = vst.msk [vmem:[#allocation2 + $0xa1] ss:$8 sm:$0x3] %vm1668_vm2, %v588_v22 }
 0x190   :  { %593 = vst [vmem:[#allocation1] sm:$0xff] %v1706_v54 }
 0x191   :  { %594 = vst [vmem:[#allocation1 + $0x9] sm:$0xff] %v1701_v51 }
 0x192   :  { %1268 = vmatpush.xpose.msra.mxu2 %v691_v23  ;;  %1288 = vmatpush.xpose.msra.mxu3 %v692_v25 }
 0x196   :  { %v653_v28 = vld [vmem:[#allocation2 + $0xa0] sm:$0xff]  ;;  %v654_v29 = vld [vmem:[#allocation2 + $0xa8] sm:$0xff] }
 0x197   :  { %1149 = vmatmul.f32.vlgmr.msrb.gmra.mxu0 %v653_v28  ;;  %1169 = vmatmul.f32.vlgmr.msrb.gmra.mxu1 %v654_v29 }
 0x198   :  { %v596_v30 = vld [vmem:[#allocation1 + $0x3] ss:$9 sm:$0xff]  ;;  %1307 = vmatpush.xpose.msrb.mxu0 %v725_v26  ;;  %1327 = vmatpush.xpose.msrb.mxu1 %v726_v27 }
 0x199   :  { %599 = vst.msk [vmem:[#allocation2 + $0xb1] ss:$8 sm:$0x3] %vm1668_vm2, %v596_v30 }
 0x19a   :  { %601 = vst [vmem:[#allocation1] sm:$0xff] %v1706_v54 }
 0x19b   :  { %602 = vst [vmem:[#allocation1 + $0x9] sm:$0xff] %v1701_v51 }
 0x19c   :  { %1308 = vmatpush.xpose.msrb.mxu0 %v693_v31  ;;  %1328 = vmatpush.xpose.msrb.mxu1 %v694_v32 }
 0x1a0   :  { %v655_v36 = vld [vmem:[#allocation2 + $0xb0] sm:$0xff]  ;;  %v656_v37 = vld [vmem:[#allocation2 + $0xb8] sm:$0xff] }
 0x1a1   :  { %1189 = vmatmul.f32.vlgmr.msrb.gmra.mxu2 %v655_v36  ;;  %1209 = vmatmul.f32.vlgmr.msrb.gmra.mxu3 %v656_v37 }
 0x1a2   :  { %v604_v38 = vld [vmem:[#allocation1 + $0x4] ss:$9 sm:$0xff]  ;;  %1347 = vmatpush.xpose.msrb.mxu2 %v727_v34  ;;  %1367 = vmatpush.xpose.msrb.mxu3 %v728_v35 }
 0x1a3   :  { %607 = vst.msk [vmem:[#allocation2 + $0xc1] ss:$8 sm:$0x3] %vm1668_vm2, %v604_v38 }
 0x1a4   :  { %609 = vst [vmem:[#allocation1] sm:$0xff] %v1706_v54 }
 0x1a5   :  { %610 = vst [vmem:[#allocation1 + $0x9] sm:$0xff] %v1701_v51 }
 0x1a6   :  { %1348 = vmatpush.xpose.msrb.mxu2 %v695_v39  ;;  %1368 = vmatpush.xpose.msrb.mxu3 %v696_v41 }
 0x1aa   :  { %v657_v42 = vld [vmem:[#allocation2 + $0xc0] sm:$0xff]  ;;  %v658_v43 = vld [vmem:[#allocation2 + $0xc8] sm:$0xff] }
 0x1ab   :  { %1229 = vmatmul.f32.vlgmr.msra.gmra.mxu0 %v657_v42  ;;  %1249 = vmatmul.f32.vlgmr.msra.gmra.mxu1 %v658_v43 }
 0x1ac   :  { %v612_v44 = vld [vmem:[#allocation1 + $0x5] ss:$9 sm:$0xff] }
 0x1ad   :  { %615 = vst.msk [vmem:[#allocation2 + $0xd1] ss:$8 sm:$0x3] %vm1668_vm2, %v612_v44 }
 0x1ae   :  { %617 = vst [vmem:[#allocation1] sm:$0xff] %v1706_v54 }
 0x1af   :  { %618 = vst [vmem:[#allocation1 + $0x9] sm:$0xff] %v1701_v51 }
 0x1b4   :  { %v659_v45 = vld [vmem:[#allocation2 + $0xd0] sm:$0xff]  ;;  %v660_v46 = vld [vmem:[#allocation2 + $0xd8] sm:$0xff] }
 0x1b5   :  { %1269 = vmatmul.f32.vlgmr.msra.gmra.mxu2 %v659_v45  ;;  %1289 = vmatmul.f32.vlgmr.msra.gmra.mxu3 %v660_v46 }
 0x1b6   :  { %v620_v47 = vld [vmem:[#allocation1 + $0x6] ss:$9 sm:$0xff] }
 0x1b7   :  { %623 = vst.msk [vmem:[#allocation2 + $0xe1] ss:$8 sm:$0x3] %vm1668_vm2, %v620_v47 }
 0x1b8   :  { %625 = vst [vmem:[#allocation1] sm:$0xff] %v1706_v54  ;;  %v751_v54 = vadd.f32 %v1480_v55, %v750_v56 }
 0x1b9   :  { %626 = vst [vmem:[#allocation1 + $0x9] sm:$0xff] %v1701_v51 }
 0x1ba   :  { %v771_v58 = vadd.f32 %v770_v57, %v751_v54 }
 0x1be   :  { %v661_v48 = vld [vmem:[#allocation2 + $0xe0] sm:$0xff]  ;;  %v662_v49 = vld [vmem:[#allocation2 + $0xe8] sm:$0xff] }
 0x1bf   :  { %1309 = vmatmul.f32.vlgmr.msrb.gmra.mxu0 %v661_v48  ;;  %1329 = vmatmul.f32.vlgmr.msrb.gmra.mxu1 %v662_v49 }
 0x1c0   :  { %v628_v50 = vld [vmem:[#allocation1 + $0x7] ss:$9 sm:$0xff] }
 0x1c1   :  { %631 = vst.msk [vmem:[#allocation2 + $0xf1] ss:$8 sm:$0x3] %vm1668_vm2, %v628_v50 }
 0x1c8   :  { %v663_v52 = vld [vmem:[#allocation2 + $0xf0] sm:$0xff]  ;;  %v664_v53 = vld [vmem:[#allocation2 + $0xf8] sm:$0xff] }
 0x1c9   :  { %1349 = vmatmul.f32.vlgmr.msrb.gmra.mxu2 %v663_v52  ;;  %1369 = vmatmul.f32.vlgmr.msrb.gmra.mxu3 %v664_v53 }
 0x1ce   :  { %v790_v51 = vpop.f32.mrf.mxu2  ;;  %v810_v60 = vpop.f32.mrf.mxu3 }
 0x1cf   :  { %v791_v59 = vadd.f32 %v790_v51, %v771_v58 }
 0x1d1   :  { %v811_v61 = vadd.f32 %v810_v60, %v791_v59  ;;  %v830_v62 = vpop.f32.mrf.mxu0  ;;  %v850_v24 = vpop.f32.mrf.mxu1 }
 0x1d3   :  { %v831_v63 = vadd.f32 %v830_v62, %v811_v61 }
 0x1d5   :  { %v851_v1 = vadd.f32 %v850_v24, %v831_v63 }
 0x1de   :  { %v870_v0 = vpop.f32.mrf.mxu2  ;;  %v890_v3 = vpop.f32.mrf.mxu3 }
 0x1df   :  { %v871_v2 = vadd.f32 %v870_v0, %v851_v1 }
 0x1e1   :  { %v891_v4 = vadd.f32 %v890_v3, %v871_v2 }
 0x1e2   :  { %v910_v33 = vpop.f32.mrf.mxu0  ;;  %v930_v5 = vpop.f32.mrf.mxu1 }
 0x1e3   :  { %v911_v40 = vadd.f32 %v910_v33, %v891_v4 }
 0x1e5   :  { %v931_v7 = vadd.f32 %v930_v5, %v911_v40 }
 0x1f2   :  { %v950_v6 = vpop.f32.mrf.mxu2  ;;  %v970_v9 = vpop.f32.mrf.mxu3 }
 0x1f3   :  { %v951_v8 = vadd.f32 %v950_v6, %v931_v7 }
 0x1f5   :  { %v971_v10 = vadd.f32 %v970_v9, %v951_v8 }
 0x1f6   :  { %v990_v11 = vpop.f32.mrf.mxu0  ;;  %v1010_v13 = vpop.f32.mrf.mxu1 }
 0x1f7   :  { %v991_v12 = vadd.f32 %v990_v11, %v971_v10 }
 0x1f9   :  { %v1011_v15 = vadd.f32 %v1010_v13, %v991_v12 }
 0x1fe   :  { %v1070_v19 = vpop.f32.mrf.mxu0  ;;  %v1090_v21 = vpop.f32.mrf.mxu1 }
 0x206   :  { %v1030_v14 = vpop.f32.mrf.mxu2  ;;  %v1050_v17 = vpop.f32.mrf.mxu3 }
 0x207   :  { %v1031_v16 = vadd.f32 %v1030_v14, %v1011_v15 }
 0x209   :  { %v1051_v18 = vadd.f32 %v1050_v17, %v1031_v16 }
 0x20b   :  { %v1071_v20 = vadd.f32 %v1070_v19, %v1051_v18 }
 0x20d   :  { %v1091_v22 = vadd.f32 %v1090_v21, %v1071_v20 }
 0x210   :  { %v1110_v23 = vpop.f32.mrf.mxu2  ;;  %v1130_v26 = vpop.f32.mrf.mxu3 }
 0x211   :  { %v1111_v25 = vadd.f32 %v1110_v23, %v1091_v22 }
 0x213   :  { %v1131_v27 = vadd.f32 %v1130_v26, %v1111_v25 }
 0x214   :  { %v1150_v28 = vpop.f32.mrf.mxu0  ;;  %v1170_v30 = vpop.f32.mrf.mxu1 }
 0x215   :  { %v1151_v29 = vadd.f32 %v1150_v28, %v1131_v27 }
 0x217   :  { %v1171_v32 = vadd.f32 %v1170_v30, %v1151_v29 }
 0x224   :  { %v1190_v31 = vpop.f32.mrf.mxu2  ;;  %v1210_v35 = vpop.f32.mrf.mxu3 }
 0x225   :  { %v1191_v34 = vadd.f32 %v1190_v31, %v1171_v32 }
 0x227   :  { %v1211_v36 = vadd.f32 %v1210_v35, %v1191_v34 }
 0x228   :  { %v1230_v37 = vpop.f32.mrf.mxu0  ;;  %v1250_v39 = vpop.f32.mrf.mxu1 }
 0x229   :  { %v1231_v38 = vadd.f32 %v1230_v37, %v1211_v36 }
 0x22b   :  { %v1251_v42 = vadd.f32 %v1250_v39, %v1231_v38 }
 0x238   :  { %v1270_v41 = vpop.f32.mrf.mxu2  ;;  %v1290_v44 = vpop.f32.mrf.mxu3 }
 0x239   :  { %v1271_v43 = vadd.f32 %v1270_v41, %v1251_v42 }
 0x23b   :  { %v1291_v45 = vadd.f32 %v1290_v44, %v1271_v43 }
 0x23c   :  { %v1310_v46 = vpop.f32.mrf.mxu0  ;;  %v1330_v48 = vpop.f32.mrf.mxu1 }
 0x23d   :  { %v1311_v47 = vadd.f32 %v1310_v46, %v1291_v45 }
 0x23f   :  { %v1331_v49 = vadd.f32 %v1330_v48, %v1311_v47 }
 0x24c   :  { %v1350_v50 = vpop.f32.mrf.mxu2  ;;  %v1370_v53 = vpop.f32.mrf.mxu3 }
 0x24d   :  { %v1351_v52 = vadd.f32 %v1350_v50, %v1331_v49 }
 0x24f   :  { %v1371_v55 = vadd.f32 %v1370_v53, %v1351_v52 }
 0x251   :  { %1374 = vst.msk [vmem:[%s2008_s4] sm:$0xff] %vm1373_vm3, %v1371_v55 }

</bundles_post_ra>
